<compile_context>
chip_gen: v7x
topology: tpu7x:2x2x1
jax: 0.10.0
libtpu: 0.0.40
codegen_flags: <defaults>
</compile_context>

<pallas_src>
import functools

import jax
import jax.numpy as jnp
import numpy as np
from jax import lax
from jax.experimental import pallas as pl
from jax.experimental.pallas import tpu as pltpu

ROW_CHUNK = 8  # one sublane group; the tap chain stays register-resident per chunk


def _round_up(x, m):
    return (x + m - 1) // m * m


def _vmem_budget_bytes():
    """Per-generation VMEM budget (scoped limit) for this kernel."""
    try:
        cap = int(pltpu.get_tpu_info().vmem_capacity_bytes)
    except Exception:
        cap = 64 << 20  # conservative (v7x per-TC size); safe on every generation
    return int(cap * 0.75)  # ~48 MiB on v7x, ~96 MiB on v5e/v6e


def _choose_tiles(hw, m, n_taps, tile_budget_bytes):
    """Pick (row_tile, HW_pad, n_row, col_tile, M_pad, n_col) within the budget."""
    # Column tile: multiple of 128 (lane-dense stores), target 1024 lanes.
    m_pad128 = _round_up(m, 128)
    col_cap = min(1024, m_pad128)
    n_col = -(-m_pad128 // col_cap)
    col_tile = _round_up(-(-m_pad128 // n_col), 128)
    m_pad = col_tile * n_col

    # Row tile: multiple of 8, as large as the VMEM budget allows.
    table_bytes = 2 * 2 * n_taps * col_tile * 4            # src + kval, double-buffered
    scratch_bytes = 2 * n_taps * ROW_CHUNK * col_tile * 4  # broadcast scratch
    avail = max(tile_budget_bytes - table_bytes - scratch_bytes,
                2 * ROW_CHUNK * col_tile * 4)
    row_cap = max(8, min(2048, (avail // (2 * col_tile * 4)) // 8 * 8))

    hw_pad8 = _round_up(hw, 8)
    n_row = max(1, -(-hw_pad8 // row_cap))
    row_tile = _round_up(-(-hw_pad8 // n_row), 8)
    hw_pad = row_tile * n_row
    return row_tile, hw_pad, n_row, col_tile, m_pad, n_col


def _conv_as_matrix_kernel(src_ref, kval_ref, w_ref, src_b_ref, val_b_ref, *,
                           row_tile, col_tile, n_taps, row_chunk):
    """Writes one (row_tile, col_tile) tile of one channel of the conv matrix.

    src_ref  : (n_taps, col_tile) int32  spatial index each column reads per tap (-1: none)
    kval_ref : (n_taps, col_tile) f32    kernel value for (this block's channel, tap, column)
    w_ref    : (row_tile, col_tile) f32  output tile (rows = spatial indices within channel)
    src_b_ref, val_b_ref : (n_taps, row_chunk, col_tile) VMEM scratch with the
        table rows broadcast across sublanes (filled once per grid step).
    """
    hw0 = pl.program_id(1) * row_tile

    # Sublane-broadcast each tap's (1, col_tile) table row once per grid step;
    # amortized over all row chunks, the hot loop below then issues only plain
    # aligned vector loads on the (slack-rich) vld slot.
    for q in range(n_taps):
        src_b_ref[q, :, :] = jnp.broadcast_to(
            src_ref[pl.ds(q, 1), :], (row_chunk, col_tile))
        val_b_ref[q, :, :] = jnp.broadcast_to(
            kval_ref[pl.ds(q, 1), :], (row_chunk, col_tile))

    base_rows = hw0 + lax.broadcasted_iota(jnp.int32, (row_chunk, col_tile), 0)

    # 8-row chunks keep acc (and the whole tap chain) vreg-resident: one vector
    # store per output vreg, no per-tap VMEM round trip.
    @pl.loop(0, row_tile // row_chunk)
    def _(chunk):
        r0 = pl.multiple_of(chunk * row_chunk, row_chunk)
        rows = base_rows + r0
        acc = jnp.zeros((row_chunk, col_tile), jnp.float32)
        # Taps are mutually exclusive per (row, column) and -1 never equals a
        # valid row index, so select-into-acc (no add) is exact.
        for q in range(n_taps):
            acc = jnp.where(rows == src_b_ref[q], val_b_ref[q], acc)
        w_ref[pl.ds(r0, row_chunk), :] = acc


def conv_as_explicit_matrix(conv_w, input_shape, stride, padding):
    """Returns the conv linear map directly as weights of shape (N, M)."""
    C, H, W = input_shape
    out_c, in_c, kh, kw = conv_w.shape
    assert in_c == C
    sh, sw = stride
    ph, pw = padding
    H_out = (H + 2 * ph - kh) // sh + 1
    W_out = (W + 2 * pw - kw) // sw + 1
    HW = H * W
    N = C * HW
    M = out_c * H_out * W_out
    n_taps = kh * kw

    # ---- tiny per-tap column tables (plain-JAX glue) ----
    # tap q = dh*kw + dw, column m = oc*Ho*Wo + oh*Wo + ow:
    #   src_tbl[q, m] = (oh*sh + dh - ph)*W + (ow*sw + dw - pw), or -1 if outside
    #   kval[c, q, m] = conv_w[oc, c, dh, dw]
    dh = jnp.arange(kh)
    dw = jnp.arange(kw)
    oh = jnp.arange(H_out)
    ow = jnp.arange(W_out)
    src_h = oh[None, :] * sh + dh[:, None] - ph                 # (kh, Ho)
    src_w = ow[None, :] * sw + dw[:, None] - pw                 # (kw, Wo)
    valid = ((src_h >= 0) & (src_h < H))[:, None, :, None] & \
            ((src_w >= 0) & (src_w < W))[None, :, None, :]      # (kh, kw, Ho, Wo)
    src_hw = src_h[:, None, :, None] * W + src_w[None, :, None, :]
    src_hw = jnp.where(valid, src_hw, -1).astype(jnp.int32)
    src_tbl = jnp.broadcast_to(
        src_hw[:, :, None, :, :], (kh, kw, out_c, H_out, W_out)).reshape(n_taps, M)
    k_t = jnp.transpose(conv_w.astype(jnp.float32), (1, 2, 3, 0))  # (C, kh, kw, out_c)
    kval = jnp.broadcast_to(
        k_t[:, :, :, :, None, None], (C, kh, kw, out_c, H_out, W_out)).reshape(C, n_taps, M)

    # ---- budget-driven tile sizing (per generation) ----
    vmem_budget = _vmem_budget_bytes()
    (row_tile, HW_pad, n_row_tiles,
     col_tile, M_pad, n_col_tiles) = _choose_tiles(HW, M, n_taps, int(vmem_budget * 0.6))

    if M_pad != M:  # padded columns: src=-1 never matches, kval=0 -> block stays zero
        src_tbl = jnp.pad(src_tbl, ((0, 0), (0, M_pad - M)), constant_values=-1)
        kval = jnp.pad(kval, ((0, 0), (0, 0), (0, M_pad - M)))

    kernel = functools.partial(
        _conv_as_matrix_kernel, row_tile=row_tile, col_tile=col_tile,
        n_taps=n_taps, row_chunk=ROW_CHUNK)

    grid = (C, n_row_tiles, n_col_tiles)  # all independent -> megacore-shardable
    # TODO(synk): if C == n_row_tiles == n_col_tiles == 1 a single grid step
    # leaves one v7x TensorCore idle; such layers are tiny so we don't flatten.

    w3 = pl.pallas_call(
        kernel,
        out_shape=jax.ShapeDtypeStruct((C, HW_pad, M_pad), jnp.float32),
        grid=grid,
        in_specs=[
            # per-tap source-pixel table: grid-invariant across (c, t)
            pl.BlockSpec((n_taps, col_tile), lambda c, t, j: (0, j)),
            # per-channel kernel-value table: only this channel's column slab
            pl.BlockSpec((None, n_taps, col_tile), lambda c, t, j: (c, 0, j)),
        ],
        out_specs=pl.BlockSpec((None, row_tile, col_tile), lambda c, t, j: (c, t, j)),
        scratch_shapes=[
            pltpu.VMEM((n_taps, ROW_CHUNK, col_tile), jnp.int32),
            pltpu.VMEM((n_taps, ROW_CHUNK, col_tile), jnp.float32),
        ],
        compiler_params=pltpu.CompilerParams(
            dimension_semantics=("parallel", "parallel", "parallel"),
            vmem_limit_bytes=vmem_budget,
        ),
    )(src_tbl, kval)

    # Strip row/column padding (no-op copy when shapes were already aligned).
    if HW_pad != HW or M_pad != M:
        w3 = w3[:, :HW, :M]
    weights = w3.reshape(N, M)
    return weights, (H_out, W_out)


def deeppoly_conv_forward(conv_w, conv_b, stride, padding, input_shape, flag=False):
    """Mirrors DeepPolyConvolutionalLayer.forward (flag=False path)."""
    out_c = conv_w.shape[0]
    if conv_b is None:
        conv_b = jnp.zeros((out_c,), jnp.float32)

    weights, (H_out, W_out) = conv_as_explicit_matrix(
        conv_w, input_shape, stride, padding)
    lower_weights = weights
    upper_weights = weights

    # bias row: ones(out_c, Ho, Wo) * bias[:, None, None], flattened -> (1, M)
    bias = jnp.broadcast_to(
        conv_b.astype(jnp.float32)[:, None, None], (out_c, H_out, W_out)).reshape(1, -1)
    lower_bias = bias
    upper_bias = bias

    if flag:
        # TODO(synk): backsubstitution over previous layers lives outside this module; not implemented.
        raise NotImplementedError("flag=True requires external backsubstitution()")
    lower_bound = jnp.full_like(lower_bias, -jnp.inf)
    upper_bound = jnp.full_like(upper_bias, jnp.inf)

    return lower_bound, upper_bound, lower_weights, upper_weights, lower_bias, upper_bias


if __name__ == "__main__":
    key = jax.random.PRNGKey(0)
    k_w, k_b, k_x, k_w2, k_b2, k_x2 = jax.random.split(key, 6)

    def check(conv_w, conv_b, stride, padding, input_shape, x):
        lb, ub, lw, uw, lbias, ubias = deeppoly_conv_forward(
            conv_w, conv_b, stride, padding, input_shape, flag=False)
        jax.block_until_ready((lb, ub, lw, uw, lbias, ubias))

        ref = lax.conv_general_dilated(
            x[None], conv_w, window_strides=stride,
            padding=[(padding[0], padding[0]), (padding[1], padding[1])],
            dimension_numbers=("NCHW", "OIHW", "NCHW"),
            precision=lax.Precision.HIGHEST,
        )[0] + conv_b[:, None, None]
        out_c, H_out, W_out = ref.shape
        C, H, W = input_shape
        M = out_c * H_out * W_out

        via_matrix = (
            jnp.dot(x.reshape(1, -1), lw, precision=lax.Precision.HIGHEST) + lbias
        ).reshape(out_c, H_out, W_out)
        np.testing.assert_allclose(
            np.asarray(via_matrix), np.asarray(ref), rtol=1e-4, atol=1e-4)

        assert lw.shape == (C * H * W, M) and uw.shape == (C * H * W, M)
        assert lb.shape == (1, M) and ub.shape == (1, M)
        assert bool(jnp.all(jnp.isneginf(lb))) and bool(jnp.all(jnp.isposinf(ub)))

    # Aligned case: (C,H,W)=(4,16,16), out_c=8, 3x3 kernel, stride 2, padding 1.
    C, H, W = 4, 16, 16
    conv_w = 0.1 * jax.random.normal(k_w, (8, C, 3, 3), jnp.float32)
    conv_b = 0.1 * jax.random.normal(k_b, (8,), jnp.float32)
    x = jax.random.normal(k_x, (C, H, W), jnp.float32)
    check(conv_w, conv_b, (2, 2), (1, 1), (C, H, W), x)

    # Unaligned case: H*W=49 (not a multiple of 8) and M=245 (not a multiple of
    # 128) — exercises the row/column padding paths that replaced the old
    # NotImplementedError.
    C2, H2, W2 = 3, 7, 7
    conv_w2 = 0.1 * jax.random.normal(k_w2, (5, C2, 3, 3), jnp.float32)
    conv_b2 = 0.1 * jax.random.normal(k_b2, (5,), jnp.float32)
    x2 = jax.random.normal(k_x2, (C2, H2, W2), jnp.float32)
    check(conv_w2, conv_b2, (1, 1), (1, 1), (C2, H2, W2), x2)

    print("KERNEL_OK")
</pallas_src>

<mosaic_0001>
module attributes {stable_mosaic.version = 11 : i64} {
  func.func @_conv_as_matrix_kernel(%arg0: i32, %arg1: i32, %arg2: i32, %arg3: memref<9x512xi32, #tpu.memory_space<vmem>>, %arg4: memref<1x9x512xf32, #tpu.memory_space<vmem>>, %arg5: memref<1x256x512xf32, #tpu.memory_space<vmem>>, %arg6: memref<9x8x512xi32, #tpu.memory_space<vmem>>, %arg7: memref<9x8x512xf32, #tpu.memory_space<vmem>>) attributes {dimension_semantics = [#tpu.dimension_semantics<parallel>, #tpu.dimension_semantics<parallel>, #tpu.dimension_semantics<parallel>], iteration_bounds = array<i64: 4, 1, 1>, scalar_prefetch = 0 : i64, scratch_operands = 2 : i64, tpu.core_type = #tpu.core_type<tc>, window_params = [{transform_indices = @transform_0, window_bounds = array<i64: 9, 512>}, {transform_indices = @transform_1, window_bounds = array<i64: 1, 9, 512>}, {transform_indices = @transform_2, window_bounds = array<i64: 1, 256, 512>}]} {
    %c256_i32 = arith.constant 256 : i32
    %0 = arith.muli %arg1, %c256_i32 : i32
    %c0 = arith.constant 0 : index
    %c0_0 = arith.constant 0 : index
    %1 = vector.load %arg3[%c0, %c0_0] : memref<9x512xi32, #tpu.memory_space<vmem>>, vector<1x512xi32>
    %2 = vector.shape_cast %1 : vector<1x512xi32> to vector<1x512xi32>
    %3 = vector.broadcast %2 : vector<1x512xi32> to vector<8x512xi32>
    %c0_1 = arith.constant 0 : index
    %c0_2 = arith.constant 0 : index
    %c0_3 = arith.constant 0 : index
    %4 = vector.load %arg6[%c0_1, %c0_2, %c0_3] : memref<9x8x512xi32, #tpu.memory_space<vmem>>, vector<1x8x512xi32>
    %5 = vector.shape_cast %4 : vector<1x8x512xi32> to vector<8x512xi32>
    %6 = vector.shape_cast %3 : vector<8x512xi32> to vector<1x8x512xi32>
    tpu.vector_store %arg6[%c0_1, %c0_2, %c0_3], %6 {strides = array<i32>} : memref<9x8x512xi32, #tpu.memory_space<vmem>>, vector<1x8x512xi32>,
    %c0_4 = arith.constant 0 : index
    %c0_5 = arith.constant 0 : index
    %c0_6 = arith.constant 0 : index
    %7 = vector.load %arg4[%c0_4, %c0_5, %c0_6] : memref<1x9x512xf32, #tpu.memory_space<vmem>>, vector<1x1x512xf32>
    %8 = vector.shape_cast %7 : vector<1x1x512xf32> to vector<1x512xf32>
    %9 = vector.shape_cast %8 : vector<1x512xf32> to vector<1x512xf32>
    %10 = vector.broadcast %9 : vector<1x512xf32> to vector<8x512xf32>
    %c0_7 = arith.constant 0 : index
    %c0_8 = arith.constant 0 : index
    %c0_9 = arith.constant 0 : index
    %11 = vector.load %arg7[%c0_7, %c0_8, %c0_9] : memref<9x8x512xf32, #tpu.memory_space<vmem>>, vector<1x8x512xf32>
    %12 = vector.shape_cast %11 : vector<1x8x512xf32> to vector<8x512xf32>
    %13 = vector.shape_cast %10 : vector<8x512xf32> to vector<1x8x512xf32>
    tpu.vector_store %arg7[%c0_7, %c0_8, %c0_9], %13 {strides = array<i32>} : memref<9x8x512xf32, #tpu.memory_space<vmem>>, vector<1x8x512xf32>,
    %c1 = arith.constant 1 : index
    %c0_10 = arith.constant 0 : index
    %14 = vector.load %arg3[%c1, %c0_10] : memref<9x512xi32, #tpu.memory_space<vmem>>, vector<1x512xi32>
    %15 = vector.shape_cast %14 : vector<1x512xi32> to vector<1x512xi32>
    %16 = vector.broadcast %15 : vector<1x512xi32> to vector<8x512xi32>
    %c1_11 = arith.constant 1 : index
    %c0_12 = arith.constant 0 : index
    %c0_13 = arith.constant 0 : index
    %17 = vector.load %arg6[%c1_11, %c0_12, %c0_13] : memref<9x8x512xi32, #tpu.memory_space<vmem>>, vector<1x8x512xi32>
    %18 = vector.shape_cast %17 : vector<1x8x512xi32> to vector<8x512xi32>
    %19 = vector.shape_cast %16 : vector<8x512xi32> to vector<1x8x512xi32>
    tpu.vector_store %arg6[%c1_11, %c0_12, %c0_13], %19 {strides = array<i32>} : memref<9x8x512xi32, #tpu.memory_space<vmem>>, vector<1x8x512xi32>,
    %c0_14 = arith.constant 0 : index
    %c1_15 = arith.constant 1 : index
    %c0_16 = arith.constant 0 : index
    %20 = vector.load %arg4[%c0_14, %c1_15, %c0_16] : memref<1x9x512xf32, #tpu.memory_space<vmem>>, vector<1x1x512xf32>
    %21 = vector.shape_cast %20 : vector<1x1x512xf32> to vector<1x512xf32>
    %22 = vector.shape_cast %21 : vector<1x512xf32> to vector<1x512xf32>
    %23 = vector.broadcast %22 : vector<1x512xf32> to vector<8x512xf32>
    %c1_17 = arith.constant 1 : index
    %c0_18 = arith.constant 0 : index
    %c0_19 = arith.constant 0 : index
    %24 = vector.load %arg7[%c1_17, %c0_18, %c0_19] : memref<9x8x512xf32, #tpu.memory_space<vmem>>, vector<1x8x512xf32>
    %25 = vector.shape_cast %24 : vector<1x8x512xf32> to vector<8x512xf32>
    %26 = vector.shape_cast %23 : vector<8x512xf32> to vector<1x8x512xf32>
    tpu.vector_store %arg7[%c1_17, %c0_18, %c0_19], %26 {strides = array<i32>} : memref<9x8x512xf32, #tpu.memory_space<vmem>>, vector<1x8x512xf32>,
    %c2 = arith.constant 2 : index
    %c0_20 = arith.constant 0 : index
    %27 = vector.load %arg3[%c2, %c0_20] : memref<9x512xi32, #tpu.memory_space<vmem>>, vector<1x512xi32>
    %28 = vector.shape_cast %27 : vector<1x512xi32> to vector<1x512xi32>
    %29 = vector.broadcast %28 : vector<1x512xi32> to vector<8x512xi32>
    %c2_21 = arith.constant 2 : index
    %c0_22 = arith.constant 0 : index
    %c0_23 = arith.constant 0 : index
    %30 = vector.load %arg6[%c2_21, %c0_22, %c0_23] : memref<9x8x512xi32, #tpu.memory_space<vmem>>, vector<1x8x512xi32>
    %31 = vector.shape_cast %30 : vector<1x8x512xi32> to vector<8x512xi32>
    %32 = vector.shape_cast %29 : vector<8x512xi32> to vector<1x8x512xi32>
    tpu.vector_store %arg6[%c2_21, %c0_22, %c0_23], %32 {strides = array<i32>} : memref<9x8x512xi32, #tpu.memory_space<vmem>>, vector<1x8x512xi32>,
    %c0_24 = arith.constant 0 : index
    %c2_25 = arith.constant 2 : index
    %c0_26 = arith.constant 0 : index
    %33 = vector.load %arg4[%c0_24, %c2_25, %c0_26] : memref<1x9x512xf32, #tpu.memory_space<vmem>>, vector<1x1x512xf32>
    %34 = vector.shape_cast %33 : vector<1x1x512xf32> to vector<1x512xf32>
    %35 = vector.shape_cast %34 : vector<1x512xf32> to vector<1x512xf32>
    %36 = vector.broadcast %35 : vector<1x512xf32> to vector<8x512xf32>
    %c2_27 = arith.constant 2 : index
    %c0_28 = arith.constant 0 : index
    %c0_29 = arith.constant 0 : index
    %37 = vector.load %arg7[%c2_27, %c0_28, %c0_29] : memref<9x8x512xf32, #tpu.memory_space<vmem>>, vector<1x8x512xf32>
    %38 = vector.shape_cast %37 : vector<1x8x512xf32> to vector<8x512xf32>
    %39 = vector.shape_cast %36 : vector<8x512xf32> to vector<1x8x512xf32>
    tpu.vector_store %arg7[%c2_27, %c0_28, %c0_29], %39 {strides = array<i32>} : memref<9x8x512xf32, #tpu.memory_space<vmem>>, vector<1x8x512xf32>,
    %c3 = arith.constant 3 : index
    %c0_30 = arith.constant 0 : index
    %40 = vector.load %arg3[%c3, %c0_30] : memref<9x512xi32, #tpu.memory_space<vmem>>, vector<1x512xi32>
    %41 = vector.shape_cast %40 : vector<1x512xi32> to vector<1x512xi32>
    %42 = vector.broadcast %41 : vector<1x512xi32> to vector<8x512xi32>
    %c3_31 = arith.constant 3 : index
    %c0_32 = arith.constant 0 : index
    %c0_33 = arith.constant 0 : index
    %43 = vector.load %arg6[%c3_31, %c0_32, %c0_33] : memref<9x8x512xi32, #tpu.memory_space<vmem>>, vector<1x8x512xi32>
    %44 = vector.shape_cast %43 : vector<1x8x512xi32> to vector<8x512xi32>
    %45 = vector.shape_cast %42 : vector<8x512xi32> to vector<1x8x512xi32>
    tpu.vector_store %arg6[%c3_31, %c0_32, %c0_33], %45 {strides = array<i32>} : memref<9x8x512xi32, #tpu.memory_space<vmem>>, vector<1x8x512xi32>,
    %c0_34 = arith.constant 0 : index
    %c3_35 = arith.constant 3 : index
    %c0_36 = arith.constant 0 : index
    %46 = vector.load %arg4[%c0_34, %c3_35, %c0_36] : memref<1x9x512xf32, #tpu.memory_space<vmem>>, vector<1x1x512xf32>
    %47 = vector.shape_cast %46 : vector<1x1x512xf32> to vector<1x512xf32>
    %48 = vector.shape_cast %47 : vector<1x512xf32> to vector<1x512xf32>
    %49 = vector.broadcast %48 : vector<1x512xf32> to vector<8x512xf32>
    %c3_37 = arith.constant 3 : index
    %c0_38 = arith.constant 0 : index
    %c0_39 = arith.constant 0 : index
    %50 = vector.load %arg7[%c3_37, %c0_38, %c0_39] : memref<9x8x512xf32, #tpu.memory_space<vmem>>, vector<1x8x512xf32>
    %51 = vector.shape_cast %50 : vector<1x8x512xf32> to vector<8x512xf32>
    %52 = vector.shape_cast %49 : vector<8x512xf32> to vector<1x8x512xf32>
    tpu.vector_store %arg7[%c3_37, %c0_38, %c0_39], %52 {strides = array<i32>} : memref<9x8x512xf32, #tpu.memory_space<vmem>>, vector<1x8x512xf32>,
    %c4 = arith.constant 4 : index
    %c0_40 = arith.constant 0 : index
    %53 = vector.load %arg3[%c4, %c0_40] : memref<9x512xi32, #tpu.memory_space<vmem>>, vector<1x512xi32>
    %54 = vector.shape_cast %53 : vector<1x512xi32> to vector<1x512xi32>
    %55 = vector.broadcast %54 : vector<1x512xi32> to vector<8x512xi32>
    %c4_41 = arith.constant 4 : index
    %c0_42 = arith.constant 0 : index
    %c0_43 = arith.constant 0 : index
    %56 = vector.load %arg6[%c4_41, %c0_42, %c0_43] : memref<9x8x512xi32, #tpu.memory_space<vmem>>, vector<1x8x512xi32>
    %57 = vector.shape_cast %56 : vector<1x8x512xi32> to vector<8x512xi32>
    %58 = vector.shape_cast %55 : vector<8x512xi32> to vector<1x8x512xi32>
    tpu.vector_store %arg6[%c4_41, %c0_42, %c0_43], %58 {strides = array<i32>} : memref<9x8x512xi32, #tpu.memory_space<vmem>>, vector<1x8x512xi32>,
    %c0_44 = arith.constant 0 : index
    %c4_45 = arith.constant 4 : index
    %c0_46 = arith.constant 0 : index
    %59 = vector.load %arg4[%c0_44, %c4_45, %c0_46] : memref<1x9x512xf32, #tpu.memory_space<vmem>>, vector<1x1x512xf32>
    %60 = vector.shape_cast %59 : vector<1x1x512xf32> to vector<1x512xf32>
    %61 = vector.shape_cast %60 : vector<1x512xf32> to vector<1x512xf32>
    %62 = vector.broadcast %61 : vector<1x512xf32> to vector<8x512xf32>
    %c4_47 = arith.constant 4 : index
    %c0_48 = arith.constant 0 : index
    %c0_49 = arith.constant 0 : index
    %63 = vector.load %arg7[%c4_47, %c0_48, %c0_49] : memref<9x8x512xf32, #tpu.memory_space<vmem>>, vector<1x8x512xf32>
    %64 = vector.shape_cast %63 : vector<1x8x512xf32> to vector<8x512xf32>
    %65 = vector.shape_cast %62 : vector<8x512xf32> to vector<1x8x512xf32>
    tpu.vector_store %arg7[%c4_47, %c0_48, %c0_49], %65 {strides = array<i32>} : memref<9x8x512xf32, #tpu.memory_space<vmem>>, vector<1x8x512xf32>,
    %c5 = arith.constant 5 : index
    %c0_50 = arith.constant 0 : index
    %66 = vector.load %arg3[%c5, %c0_50] : memref<9x512xi32, #tpu.memory_space<vmem>>, vector<1x512xi32>
    %67 = vector.shape_cast %66 : vector<1x512xi32> to vector<1x512xi32>
    %68 = vector.broadcast %67 : vector<1x512xi32> to vector<8x512xi32>
    %c5_51 = arith.constant 5 : index
    %c0_52 = arith.constant 0 : index
    %c0_53 = arith.constant 0 : index
    %69 = vector.load %arg6[%c5_51, %c0_52, %c0_53] : memref<9x8x512xi32, #tpu.memory_space<vmem>>, vector<1x8x512xi32>
    %70 = vector.shape_cast %69 : vector<1x8x512xi32> to vector<8x512xi32>
    %71 = vector.shape_cast %68 : vector<8x512xi32> to vector<1x8x512xi32>
    tpu.vector_store %arg6[%c5_51, %c0_52, %c0_53], %71 {strides = array<i32>} : memref<9x8x512xi32, #tpu.memory_space<vmem>>, vector<1x8x512xi32>,
    %c0_54 = arith.constant 0 : index
    %c5_55 = arith.constant 5 : index
    %c0_56 = arith.constant 0 : index
    %72 = vector.load %arg4[%c0_54, %c5_55, %c0_56] : memref<1x9x512xf32, #tpu.memory_space<vmem>>, vector<1x1x512xf32>
    %73 = vector.shape_cast %72 : vector<1x1x512xf32> to vector<1x512xf32>
    %74 = vector.shape_cast %73 : vector<1x512xf32> to vector<1x512xf32>
    %75 = vector.broadcast %74 : vector<1x512xf32> to vector<8x512xf32>
    %c5_57 = arith.constant 5 : index
    %c0_58 = arith.constant 0 : index
    %c0_59 = arith.constant 0 : index
    %76 = vector.load %arg7[%c5_57, %c0_58, %c0_59] : memref<9x8x512xf32, #tpu.memory_space<vmem>>, vector<1x8x512xf32>
    %77 = vector.shape_cast %76 : vector<1x8x512xf32> to vector<8x512xf32>
    %78 = vector.shape_cast %75 : vector<8x512xf32> to vector<1x8x512xf32>
    tpu.vector_store %arg7[%c5_57, %c0_58, %c0_59], %78 {strides = array<i32>} : memref<9x8x512xf32, #tpu.memory_space<vmem>>, vector<1x8x512xf32>,
    %c6 = arith.constant 6 : index
    %c0_60 = arith.constant 0 : index
    %79 = vector.load %arg3[%c6, %c0_60] : memref<9x512xi32, #tpu.memory_space<vmem>>, vector<1x512xi32>
    %80 = vector.shape_cast %79 : vector<1x512xi32> to vector<1x512xi32>
    %81 = vector.broadcast %80 : vector<1x512xi32> to vector<8x512xi32>
    %c6_61 = arith.constant 6 : index
    %c0_62 = arith.constant 0 : index
    %c0_63 = arith.constant 0 : index
    %82 = vector.load %arg6[%c6_61, %c0_62, %c0_63] : memref<9x8x512xi32, #tpu.memory_space<vmem>>, vector<1x8x512xi32>
    %83 = vector.shape_cast %82 : vector<1x8x512xi32> to vector<8x512xi32>
    %84 = vector.shape_cast %81 : vector<8x512xi32> to vector<1x8x512xi32>
    tpu.vector_store %arg6[%c6_61, %c0_62, %c0_63], %84 {strides = array<i32>} : memref<9x8x512xi32, #tpu.memory_space<vmem>>, vector<1x8x512xi32>,
    %c0_64 = arith.constant 0 : index
    %c6_65 = arith.constant 6 : index
    %c0_66 = arith.constant 0 : index
    %85 = vector.load %arg4[%c0_64, %c6_65, %c0_66] : memref<1x9x512xf32, #tpu.memory_space<vmem>>, vector<1x1x512xf32>
    %86 = vector.shape_cast %85 : vector<1x1x512xf32> to vector<1x512xf32>
    %87 = vector.shape_cast %86 : vector<1x512xf32> to vector<1x512xf32>
    %88 = vector.broadcast %87 : vector<1x512xf32> to vector<8x512xf32>
    %c6_67 = arith.constant 6 : index
    %c0_68 = arith.constant 0 : index
    %c0_69 = arith.constant 0 : index
    %89 = vector.load %arg7[%c6_67, %c0_68, %c0_69] : memref<9x8x512xf32, #tpu.memory_space<vmem>>, vector<1x8x512xf32>
    %90 = vector.shape_cast %89 : vector<1x8x512xf32> to vector<8x512xf32>
    %91 = vector.shape_cast %88 : vector<8x512xf32> to vector<1x8x512xf32>
    tpu.vector_store %arg7[%c6_67, %c0_68, %c0_69], %91 {strides = array<i32>} : memref<9x8x512xf32, #tpu.memory_space<vmem>>, vector<1x8x512xf32>,
    %c7 = arith.constant 7 : index
    %c0_70 = arith.constant 0 : index
    %92 = vector.load %arg3[%c7, %c0_70] : memref<9x512xi32, #tpu.memory_space<vmem>>, vector<1x512xi32>
    %93 = vector.shape_cast %92 : vector<1x512xi32> to vector<1x512xi32>
    %94 = vector.broadcast %93 : vector<1x512xi32> to vector<8x512xi32>
    %c7_71 = arith.constant 7 : index
    %c0_72 = arith.constant 0 : index
    %c0_73 = arith.constant 0 : index
    %95 = vector.load %arg6[%c7_71, %c0_72, %c0_73] : memref<9x8x512xi32, #tpu.memory_space<vmem>>, vector<1x8x512xi32>
    %96 = vector.shape_cast %95 : vector<1x8x512xi32> to vector<8x512xi32>
    %97 = vector.shape_cast %94 : vector<8x512xi32> to vector<1x8x512xi32>
    tpu.vector_store %arg6[%c7_71, %c0_72, %c0_73], %97 {strides = array<i32>} : memref<9x8x512xi32, #tpu.memory_space<vmem>>, vector<1x8x512xi32>,
    %c0_74 = arith.constant 0 : index
    %c7_75 = arith.constant 7 : index
    %c0_76 = arith.constant 0 : index
    %98 = vector.load %arg4[%c0_74, %c7_75, %c0_76] : memref<1x9x512xf32, #tpu.memory_space<vmem>>, vector<1x1x512xf32>
    %99 = vector.shape_cast %98 : vector<1x1x512xf32> to vector<1x512xf32>
    %100 = vector.shape_cast %99 : vector<1x512xf32> to vector<1x512xf32>
    %101 = vector.broadcast %100 : vector<1x512xf32> to vector<8x512xf32>
    %c7_77 = arith.constant 7 : index
    %c0_78 = arith.constant 0 : index
    %c0_79 = arith.constant 0 : index
    %102 = vector.load %arg7[%c7_77, %c0_78, %c0_79] : memref<9x8x512xf32, #tpu.memory_space<vmem>>, vector<1x8x512xf32>
    %103 = vector.shape_cast %102 : vector<1x8x512xf32> to vector<8x512xf32>
    %104 = vector.shape_cast %101 : vector<8x512xf32> to vector<1x8x512xf32>
    tpu.vector_store %arg7[%c7_77, %c0_78, %c0_79], %104 {strides = array<i32>} : memref<9x8x512xf32, #tpu.memory_space<vmem>>, vector<1x8x512xf32>,
    %c8 = arith.constant 8 : index
    %c0_80 = arith.constant 0 : index
    %105 = vector.load %arg3[%c8, %c0_80] : memref<9x512xi32, #tpu.memory_space<vmem>>, vector<1x512xi32>
    %106 = vector.shape_cast %105 : vector<1x512xi32> to vector<1x512xi32>
    %107 = vector.broadcast %106 : vector<1x512xi32> to vector<8x512xi32>
    %c8_81 = arith.constant 8 : index
    %c0_82 = arith.constant 0 : index
    %c0_83 = arith.constant 0 : index
    %108 = vector.load %arg6[%c8_81, %c0_82, %c0_83] : memref<9x8x512xi32, #tpu.memory_space<vmem>>, vector<1x8x512xi32>
    %109 = vector.shape_cast %108 : vector<1x8x512xi32> to vector<8x512xi32>
    %110 = vector.shape_cast %107 : vector<8x512xi32> to vector<1x8x512xi32>
    tpu.vector_store %arg6[%c8_81, %c0_82, %c0_83], %110 {strides = array<i32>} : memref<9x8x512xi32, #tpu.memory_space<vmem>>, vector<1x8x512xi32>,
    %c0_84 = arith.constant 0 : index
    %c8_85 = arith.constant 8 : index
    %c0_86 = arith.constant 0 : index
    %111 = vector.load %arg4[%c0_84, %c8_85, %c0_86] : memref<1x9x512xf32, #tpu.memory_space<vmem>>, vector<1x1x512xf32>
    %112 = vector.shape_cast %111 : vector<1x1x512xf32> to vector<1x512xf32>
    %113 = vector.shape_cast %112 : vector<1x512xf32> to vector<1x512xf32>
    %114 = vector.broadcast %113 : vector<1x512xf32> to vector<8x512xf32>
    %c8_87 = arith.constant 8 : index
    %c0_88 = arith.constant 0 : index
    %c0_89 = arith.constant 0 : index
    %115 = vector.load %arg7[%c8_87, %c0_88, %c0_89] : memref<9x8x512xf32, #tpu.memory_space<vmem>>, vector<1x8x512xf32>
    %116 = vector.shape_cast %115 : vector<1x8x512xf32> to vector<8x512xf32>
    %117 = vector.shape_cast %114 : vector<8x512xf32> to vector<1x8x512xf32>
    tpu.vector_store %arg7[%c8_87, %c0_88, %c0_89], %117 {strides = array<i32>} : memref<9x8x512xf32, #tpu.memory_space<vmem>>, vector<1x8x512xf32>,
    %118 = tpu.iota {dimensions = array<i32: 0>} : vector<8x512xi32>
    %119 = vector.broadcast %0 : i32 to vector<8x512xi32>
    %120 = arith.addi %119, %118 : vector<8x512xi32>
    %c0_i32 = arith.constant 0 : i32
    %c32_i32 = arith.constant 32 : i32
    %121 = arith.addi %c0_i32, %c32_i32 : i32
    %c1_i32 = arith.constant 1 : i32
    scf.for %arg8 = %c0_i32 to %121 step %c1_i32  : i32 {
      %c1_i32_91 = arith.constant 1 : i32
      %122 = arith.muli %arg8, %c1_i32_91 : i32
      %c0_i32_92 = arith.constant 0 : i32
      %123 = arith.addi %c0_i32_92, %122 : i32
      %c8_i32 = arith.constant 8 : i32
      %124 = arith.muli %123, %c8_i32 : i32
      %125 = tpu.assume_multiple %124, 8 : i32
      %126 = vector.broadcast %125 : i32 to vector<8x512xi32>
      %127 = arith.addi %120, %126 : vector<8x512xi32>
      %cst = arith.constant 0.000000e+00 : f32
      %128 = vector.broadcast %cst : f32 to vector<8x512xf32>
      %c0_93 = arith.constant 0 : index
      %c0_94 = arith.constant 0 : index
      %c0_95 = arith.constant 0 : index
      %129 = vector.load %arg6[%c0_93, %c0_94, %c0_95] : memref<9x8x512xi32, #tpu.memory_space<vmem>>, vector<1x8x512xi32>
      %130 = vector.shape_cast %129 : vector<1x8x512xi32> to vector<8x512xi32>
      %131 = arith.cmpi eq, %127, %130 : vector<8x512xi32>
      %c0_96 = arith.constant 0 : index
      %c0_97 = arith.constant 0 : index
      %c0_98 = arith.constant 0 : index
      %132 = vector.load %arg7[%c0_96, %c0_97, %c0_98] : memref<9x8x512xf32, #tpu.memory_space<vmem>>, vector<1x8x512xf32>
      %133 = vector.shape_cast %132 : vector<1x8x512xf32> to vector<8x512xf32>
      %134 = arith.select %131, %133, %128 : vector<8x512xi1>, vector<8x512xf32>
      %c1_99 = arith.constant 1 : index
      %c0_100 = arith.constant 0 : index
      %c0_101 = arith.constant 0 : index
      %135 = vector.load %arg6[%c1_99, %c0_100, %c0_101] : memref<9x8x512xi32, #tpu.memory_space<vmem>>, vector<1x8x512xi32>
      %136 = vector.shape_cast %135 : vector<1x8x512xi32> to vector<8x512xi32>
      %137 = arith.cmpi eq, %127, %136 : vector<8x512xi32>
      %c1_102 = arith.constant 1 : index
      %c0_103 = arith.constant 0 : index
      %c0_104 = arith.constant 0 : index
      %138 = vector.load %arg7[%c1_102, %c0_103, %c0_104] : memref<9x8x512xf32, #tpu.memory_space<vmem>>, vector<1x8x512xf32>
      %139 = vector.shape_cast %138 : vector<1x8x512xf32> to vector<8x512xf32>
      %140 = arith.select %137, %139, %134 : vector<8x512xi1>, vector<8x512xf32>
      %c2_105 = arith.constant 2 : index
      %c0_106 = arith.constant 0 : index
      %c0_107 = arith.constant 0 : index
      %141 = vector.load %arg6[%c2_105, %c0_106, %c0_107] : memref<9x8x512xi32, #tpu.memory_space<vmem>>, vector<1x8x512xi32>
      %142 = vector.shape_cast %141 : vector<1x8x512xi32> to vector<8x512xi32>
      %143 = arith.cmpi eq, %127, %142 : vector<8x512xi32>
      %c2_108 = arith.constant 2 : index
      %c0_109 = arith.constant 0 : index
      %c0_110 = arith.constant 0 : index
      %144 = vector.load %arg7[%c2_108, %c0_109, %c0_110] : memref<9x8x512xf32, #tpu.memory_space<vmem>>, vector<1x8x512xf32>
      %145 = vector.shape_cast %144 : vector<1x8x512xf32> to vector<8x512xf32>
      %146 = arith.select %143, %145, %140 : vector<8x512xi1>, vector<8x512xf32>
      %c3_111 = arith.constant 3 : index
      %c0_112 = arith.constant 0 : index
      %c0_113 = arith.constant 0 : index
      %147 = vector.load %arg6[%c3_111, %c0_112, %c0_113] : memref<9x8x512xi32, #tpu.memory_space<vmem>>, vector<1x8x512xi32>
      %148 = vector.shape_cast %147 : vector<1x8x512xi32> to vector<8x512xi32>
      %149 = arith.cmpi eq, %127, %148 : vector<8x512xi32>
      %c3_114 = arith.constant 3 : index
      %c0_115 = arith.constant 0 : index
      %c0_116 = arith.constant 0 : index
      %150 = vector.load %arg7[%c3_114, %c0_115, %c0_116] : memref<9x8x512xf32, #tpu.memory_space<vmem>>, vector<1x8x512xf32>
      %151 = vector.shape_cast %150 : vector<1x8x512xf32> to vector<8x512xf32>
      %152 = arith.select %149, %151, %146 : vector<8x512xi1>, vector<8x512xf32>
      %c4_117 = arith.constant 4 : index
      %c0_118 = arith.constant 0 : index
      %c0_119 = arith.constant 0 : index
      %153 = vector.load %arg6[%c4_117, %c0_118, %c0_119] : memref<9x8x512xi32, #tpu.memory_space<vmem>>, vector<1x8x512xi32>
      %154 = vector.shape_cast %153 : vector<1x8x512xi32> to vector<8x512xi32>
      %155 = arith.cmpi eq, %127, %154 : vector<8x512xi32>
      %c4_120 = arith.constant 4 : index
      %c0_121 = arith.constant 0 : index
      %c0_122 = arith.constant 0 : index
      %156 = vector.load %arg7[%c4_120, %c0_121, %c0_122] : memref<9x8x512xf32, #tpu.memory_space<vmem>>, vector<1x8x512xf32>
      %157 = vector.shape_cast %156 : vector<1x8x512xf32> to vector<8x512xf32>
      %158 = arith.select %155, %157, %152 : vector<8x512xi1>, vector<8x512xf32>
      %c5_123 = arith.constant 5 : index
      %c0_124 = arith.constant 0 : index
      %c0_125 = arith.constant 0 : index
      %159 = vector.load %arg6[%c5_123, %c0_124, %c0_125] : memref<9x8x512xi32, #tpu.memory_space<vmem>>, vector<1x8x512xi32>
      %160 = vector.shape_cast %159 : vector<1x8x512xi32> to vector<8x512xi32>
      %161 = arith.cmpi eq, %127, %160 : vector<8x512xi32>
      %c5_126 = arith.constant 5 : index
      %c0_127 = arith.constant 0 : index
      %c0_128 = arith.constant 0 : index
      %162 = vector.load %arg7[%c5_126, %c0_127, %c0_128] : memref<9x8x512xf32, #tpu.memory_space<vmem>>, vector<1x8x512xf32>
      %163 = vector.shape_cast %162 : vector<1x8x512xf32> to vector<8x512xf32>
      %164 = arith.select %161, %163, %158 : vector<8x512xi1>, vector<8x512xf32>
      %c6_129 = arith.constant 6 : index
      %c0_130 = arith.constant 0 : index
      %c0_131 = arith.constant 0 : index
      %165 = vector.load %arg6[%c6_129, %c0_130, %c0_131] : memref<9x8x512xi32, #tpu.memory_space<vmem>>, vector<1x8x512xi32>
      %166 = vector.shape_cast %165 : vector<1x8x512xi32> to vector<8x512xi32>
      %167 = arith.cmpi eq, %127, %166 : vector<8x512xi32>
      %c6_132 = arith.constant 6 : index
      %c0_133 = arith.constant 0 : index
      %c0_134 = arith.constant 0 : index
      %168 = vector.load %arg7[%c6_132, %c0_133, %c0_134] : memref<9x8x512xf32, #tpu.memory_space<vmem>>, vector<1x8x512xf32>
      %169 = vector.shape_cast %168 : vector<1x8x512xf32> to vector<8x512xf32>
      %170 = arith.select %167, %169, %164 : vector<8x512xi1>, vector<8x512xf32>
      %c7_135 = arith.constant 7 : index
      %c0_136 = arith.constant 0 : index
      %c0_137 = arith.constant 0 : index
      %171 = vector.load %arg6[%c7_135, %c0_136, %c0_137] : memref<9x8x512xi32, #tpu.memory_space<vmem>>, vector<1x8x512xi32>
      %172 = vector.shape_cast %171 : vector<1x8x512xi32> to vector<8x512xi32>
      %173 = arith.cmpi eq, %127, %172 : vector<8x512xi32>
      %c7_138 = arith.constant 7 : index
      %c0_139 = arith.constant 0 : index
      %c0_140 = arith.constant 0 : index
      %174 = vector.load %arg7[%c7_138, %c0_139, %c0_140] : memref<9x8x512xf32, #tpu.memory_space<vmem>>, vector<1x8x512xf32>
      %175 = vector.shape_cast %174 : vector<1x8x512xf32> to vector<8x512xf32>
      %176 = arith.select %173, %175, %170 : vector<8x512xi1>, vector<8x512xf32>
      %c8_141 = arith.constant 8 : index
      %c0_142 = arith.constant 0 : index
      %c0_143 = arith.constant 0 : index
      %177 = vector.load %arg6[%c8_141, %c0_142, %c0_143] : memref<9x8x512xi32, #tpu.memory_space<vmem>>, vector<1x8x512xi32>
      %178 = vector.shape_cast %177 : vector<1x8x512xi32> to vector<8x512xi32>
      %179 = arith.cmpi eq, %127, %178 : vector<8x512xi32>
      %c8_144 = arith.constant 8 : index
      %c0_145 = arith.constant 0 : index
      %c0_146 = arith.constant 0 : index
      %180 = vector.load %arg7[%c8_144, %c0_145, %c0_146] : memref<9x8x512xf32, #tpu.memory_space<vmem>>, vector<1x8x512xf32>
      %181 = vector.shape_cast %180 : vector<1x8x512xf32> to vector<8x512xf32>
      %182 = arith.select %179, %181, %176 : vector<8x512xi1>, vector<8x512xf32>
      %c0_147 = arith.constant 0 : index
      %183 = arith.index_cast %125 : i32 to index
      %c0_148 = arith.constant 0 : index
      %184 = vector.load %arg5[%c0_147, %183, %c0_148] : memref<1x256x512xf32, #tpu.memory_space<vmem>>, vector<1x8x512xf32>
      %185 = vector.shape_cast %184 : vector<1x8x512xf32> to vector<8x512xf32>
      %186 = vector.shape_cast %182 : vector<8x512xf32> to vector<1x8x512xf32>
      tpu.vector_store %arg5[%c0_147, %183, %c0_148], %186 {strides = array<i32>} : memref<1x256x512xf32, #tpu.memory_space<vmem>>, vector<1x8x512xf32>,
    }
    %c32_i32_90 = arith.constant 32 : i32
    return
  }
  func.func @transform_0(%arg0: i32, %arg1: i32, %arg2: i32) -> (i32, i32) {
    %c0_i32 = arith.constant 0 : i32
    %c0_i32_0 = arith.constant 0 : i32
    return %c0_i32, %arg2 : i32, i32
  }
  func.func @transform_1(%arg0: i32, %arg1: i32, %arg2: i32) -> (i32, i32, i32) {
    %c0_i32 = arith.constant 0 : i32
    %c0_i32_0 = arith.constant 0 : i32
    return %arg0, %c0_i32, %arg2 : i32, i32, i32
  }
  func.func @transform_2(%arg0: i32, %arg1: i32, %arg2: i32) -> (i32, i32, i32) {
    %c0_i32 = arith.constant 0 : i32
    return %arg0, %arg1, %arg2 : i32, i32, i32
  }
}

</mosaic_0001>

<bundles_post_ra>
// kernel: tpu_custom_call.1
= control target key start
LH: loop header
LB: loop body
LE: loop exit
PB: predicated region body
PF: predicated region fallthrough
CT: control target
= control target key end

     0   :  { %7 = vsyncpa [#allocation5], 0  ;;  %s1559_s0 = inlined_call_operand.hbm [shape: s32[9,512], index: 0, kind: input, shape index: {}]   ;;  %s1560_s1 = inlined_call_operand.vmem [shape: f32[4,9,512], index: 1, kind: input, shape index: {}]   ;;  %s1561_s2 = inlined_call_operand.hbm [shape: f32[4,256,512], index: 2, kind: output, shape index: {}]  }
   0x1   :  { %8 = vsyncpa [#allocation6], 0 }
   0x2   :  { %10 = vsyncpa [#allocation6 + $0x1], 0  ;;  %s1201_s9 = smov 0   ;;  %s1203_s10 = smov 0  }
   0x3   :  { %s1205_s11 = smov 0   ;;  %s1207_s12 = smov 0  }
   0x4   :  { %s1209_s13 = smov 0   ;;  %s1211_s14 = smov 0  }
   0x5 LB: > { %s953_s15 = sadd.s32 4294967295, %s1174_s14   ;;  %s954_s16 = sadd.s32 4294967294, %s1174_s14   ;;  %s1174_s14 = sphi %s1211_s14, %s16_s14   ;;  %s1170_s13 = sphi %s1209_s13, %s1579_s13   ;;  %s1166_s12 = sphi %s1207_s12, %s1578_s12   ;;  %s1162_s11 = sphi %s1205_s11, %s1577_s11   ;;  %s1158_s10 = sphi %s1203_s10, %s1576_s10   ;;  %s1154_s9 = sphi %s1201_s9, %s1575_s9  }
   0x6   : > { %s35_s17 = sadd.s32 1, %s1170_s13  ;;  %s100_s18 = sadd.s32 1, %s1162_s11 }
   0x7   : > { %p37_p0 = scmp.ge.s32.totalorder %s35_s17, 4  ;;  %p110_p1 = scmp.ne.s32.totalorder %s1162_s11, %s1158_s10 }
   0x8   : > { %p111_p2 = scmp.eq.s32.totalorder %s953_s15, 3  ;;  %p116_p3 = scmp.ne.s32.totalorder %s1158_s10, %s1154_s9 }
   0x9   : > { %s1581_s17 = smov (%p37_p0, %s35_s17), 0  ;;  %p117_p5 = scmp.eq.s32.totalorder %s954_s16, 3 }
   0xa   : > { %p1241_p4 = por %p111_p2, %p110_p1  ;;  %s93_s20 = ssub.s32 %s1170_s13, %s1581_s17 }
   0xb   : > { %p955_p6 = scmp.ge.s32.totalorder %s1174_s14, 1  ;;  %p98_p7 = scmp.eq.s32.totalorder %s93_s20, 0 }
   0xc   : > { %s1566_s19 = scalar_select %p1241_p4, 1, 0 }
   0xd   : > { %p1248_p8 = por %p117_p5, %p116_p3  ;;  %p124_p9 = scmp.lt.s32.totalorder %s1174_s14, 5 }
   0xe   : > { %s1254_s22 = scalar_select %p98_p7, %s1162_s11, %s100_s18  }
   0xf   : > { %s1567_s21 = scalar_select %p1248_p8, 1, 0 }
  0x10   : > { %p1256_p10 = pnand %p955_p6, %p124_p9  ;;  %p1260_p11 = scmp.eq.s32.totalorder %s953_s15, 0 }
  0x11   : > { %s1180_s25 = smov [#allocation4]   ;;  %s1060_s30 = scalar_lea.hbm %s1559_s0, 1024 }
  0x12   : > { %s1568_s23 = scalar_select %p1256_p10, 1, 0 }
  0x13   : > { %s1569_s24 = scalar_select %p1260_p11, 1, 0 }
  0x14   : > { %p988_p12 = pneg %p1256_p10  ;;  %s139_s26 = sshll.u32 %s1180_s25, 4  ;;  %s140_s26 = int_to_ptr.vmem [resolvable:$true] %s139_s26 }
  0x15   : > { %p1061_p0 = scmp.ne.s32.totalorder %s1559_s0, %s1060_s30  ;;  %p1067_p5 = scmp.lt.u32.totalorder %s1060_s30, %s1559_s0 }
  0x16   : > { %p1268_p13 = pnand %p1260_p11, %p988_p12 }
  0x18   : > { %p1062_p1 = pneg %p1268_p13 }
  0x1a   : > { %p1063_p2 = pnand %p1062_p1, %p1061_p0 }
  0x1c   : > { %p1064_p3 = pneg %p1063_p2 }
  0x1e   : > { %p1069_p6 = pnand %p1067_p5, %p1064_p3 }
  0x20   : > { %1072 = shalt.err (!%p1069_p6)
}
  0x21   : > { %s1073_s7 = scalar_lea.vmem %s140_s26, 1024  ;;  %p1081_p8 = scmp.lt.s32.totalorder %s140_s26, %s140_s26 }
  0x22   : > { %p1074_p7 = scmp.ne.s32.totalorder %s140_s26, %s1073_s7  ;;  %p1082_p4 = scmp.lt.s32.totalorder %s1073_s7, %s1073_s7 }
  0x24   : > { %p1076_p9 = pnand %p1074_p7, %p1062_p1  ;;  %p1083_p11 = por %p1082_p4, %p1081_p8 }
  0x26   : > { %p1077_p12 = pneg %p1076_p9 }
  0x28   : > { %p1084_p10 = pnand %p1083_p11, %p1077_p12 }
  0x2a   : > { %1087 = shalt.err (!%p1084_p10)
}
  0x2b   : > { %s1181_s8 = smov 512   ;;  %s1182_s15 = smov 32  }
  0x2c   : > { %991 = dma.hbm_to_vmem [thread:$0]  (!%p1268_p13), %s1559_s0, 1024, %s140_s26, [#allocation5], %s1181_s8, %s1181_s8, %s1182_s15  }
  0x2d   : > { %p1571_p0 = scmp.ne.s32.totalorder %s1568_s23, 0 }
  0x2e   : > { %p1572_p2 = scmp.ne.s32.totalorder (!%p1571_p0), %s1569_s24, 0 }
  0x2f   : > { %168 = sbr.rel (%p1571_p0) target bundleno = 151 (0x97), region = 28 }
  0x36   : > { %1145 = dma.done.wait (%p1572_p2), [#allocation5], 1024  }
  0x37   : > { %1147 = vsyncadd (%p1572_p2), [#allocation5], 4294966272  ;;  %s191_s20 = sand.u32 1, %s1158_s10   ;;  %v209_v0 = vlaneseq  ;;  %p196_p4 = scmp.lt.s32.totalorder %s1166_s12, 3 }
  0x38   : > { %s1298_s25 = sshll.u32 %s191_s20, 10  ;;  %v208_v6 = vld [vmem:[#allocation4] ss:$8 sm:$0xf]  ;;  %s1402_s30 = smov 0  }
  0x39   : > { %v1300_v1 = vshrl.u32 %v209_v0, 7  ;;  %s197_s23 = scalar_select %p196_p4, %s1166_s12, 3  ;;  %v256_v12 = vld [vmem:[#allocation4 + $0x1] ss:$8 sm:$0xf] }
  0x3a   : > { %v307_v18 = vld [vmem:[#allocation4 + $0x2] ss:$8 sm:$0xf]  ;;  %v358_v28 = vld [vmem:[#allocation4 + $0x3] ss:$8 sm:$0xf] }
  0x3b   : > { %v1304_v2 = vsub.s32 0, %v1300_v1  ;;  %v1307_v3 = vsub.s32 1, %v1300_v1  ;;  %v1310_v4 = vsub.s32 2, %v1300_v1  ;;  %v1313_v5 = vsub.s32 3, %v1300_v1  ;;  %s979_s24 = sshll.u32 %s197_s23, 6  ;;  %s193_s29 = scalar_lea.vmem [#allocation7], %s1298_s25 }
  0x3c   : > { %s1318_s28 = scalar_lea.vmem %s1560_s1, %s979_s24  ;;  %v409_v38 = vld [vmem:[#allocation4 + $0x4] ss:$8 sm:$0xf]  ;;  %v460_v48 = vld [vmem:[#allocation4 + $0x5] ss:$8 sm:$0xf] }
  0x3d   : > { %v229_v7 = vld [vmem:[%s1318_s28] ss:$8 sm:$0xf]  ;;  %v212_v8 = vrot.slane %v208_v6, %v1304_v2  ;;  %v216_v9 = vrot.slane %v208_v6, %v1307_v3  ;;  %v220_v10 = vrot.slane %v208_v6, %v1310_v4  ;;  %v224_v11 = vrot.slane %v208_v6, %v1313_v5  ;;  %v963_v13 = vld [vmem:[%s1318_s28 + $0x1] ss:$8 sm:$0xf] }
  0x3e   : > { %v234_v14 = vrot.slane %v229_v7, %v1304_v2  ;;  %v238_v15 = vrot.slane %v229_v7, %v1307_v3  ;;  %v242_v16 = vrot.slane %v229_v7, %v1310_v4  ;;  %v246_v17 = vrot.slane %v229_v7, %v1313_v5  ;;  %v964_v23 = vld [vmem:[%s1318_s28 + $0x2] ss:$8 sm:$0xf]  ;;  %v965_v33 = vld [vmem:[%s1318_s28 + $0x3] ss:$8 sm:$0xf] }
  0x3f   : > { %225 = vst [vmem:[#allocation2] sm:$0xff] %v212_v8  ;;  %226 = vst [vmem:[#allocation2 + $0x8] sm:$0xff] %v216_v9  ;;  %v260_v19 = vrot.slane %v256_v12, %v1304_v2  ;;  %v264_v20 = vrot.slane %v256_v12, %v1307_v3  ;;  %v268_v21 = vrot.slane %v256_v12, %v1310_v4  ;;  %v966_v43 = vld [vmem:[%s1318_s28 + $0x4] ss:$8 sm:$0xf] }
  0x40   : > { %227 = vst [vmem:[#allocation2 + $0x10] sm:$0xff] %v220_v10  ;;  %228 = vst [vmem:[#allocation2 + $0x18] sm:$0xff] %v224_v11  ;;  %v272_v22 = vrot.slane %v256_v12, %v1313_v5  ;;  %v284_v24 = vrot.slane %v963_v13, %v1304_v2  ;;  %v288_v25 = vrot.slane %v963_v13, %v1307_v3  ;;  %v967_v53 = vld [vmem:[%s1318_s28 + $0x5] ss:$8 sm:$0xf] }
  0x41   : > { %251 = vst [vmem:[#allocation3] sm:$0xff] %v234_v14  ;;  %252 = vst [vmem:[#allocation3 + $0x8] sm:$0xff] %v238_v15  ;;  %v292_v26 = vrot.slane %v963_v13, %v1310_v4  ;;  %v296_v27 = vrot.slane %v963_v13, %v1313_v5  ;;  %v311_v29 = vrot.slane %v307_v18, %v1304_v2  ;;  %v511_v58 = vld [vmem:[#allocation4 + $0x6] ss:$8 sm:$0xf] }
  0x42   : > { %253 = vst [vmem:[#allocation3 + $0x10] sm:$0xff] %v242_v16  ;;  %254 = vst [vmem:[#allocation3 + $0x18] sm:$0xff] %v246_v17  ;;  %v315_v30 = vrot.slane %v307_v18, %v1307_v3  ;;  %v319_v31 = vrot.slane %v307_v18, %v1310_v4  ;;  %v323_v32 = vrot.slane %v307_v18, %v1313_v5  ;;  %v968_v63 = vld [vmem:[%s1318_s28 + $0x6] ss:$8 sm:$0xf] }
  0x43   : > { %274 = vst [vmem:[#allocation2 + $0x20] sm:$0xff] %v260_v19  ;;  %275 = vst [vmem:[#allocation2 + $0x28] sm:$0xff] %v264_v20  ;;  %v335_v34 = vrot.slane %v964_v23, %v1304_v2  ;;  %v339_v35 = vrot.slane %v964_v23, %v1307_v3  ;;  %v343_v36 = vrot.slane %v964_v23, %v1310_v4  ;;  %v562_v9 = vld [vmem:[#allocation4 + $0x7] ss:$8 sm:$0xf] }
  0x44   : > { %276 = vst [vmem:[#allocation2 + $0x30] sm:$0xff] %v268_v21  ;;  %277 = vst [vmem:[#allocation2 + $0x38] sm:$0xff] %v272_v22  ;;  %v347_v37 = vrot.slane %v964_v23, %v1313_v5  ;;  %v362_v39 = vrot.slane %v358_v28, %v1304_v2  ;;  %v366_v40 = vrot.slane %v358_v28, %v1307_v3  ;;  %v969_v14 = vld [vmem:[%s1318_s28 + $0x7] ss:$8 sm:$0xf] }
  0x45   : > { %302 = vst [vmem:[#allocation3 + $0x20] sm:$0xff] %v284_v24  ;;  %303 = vst [vmem:[#allocation3 + $0x28] sm:$0xff] %v288_v25  ;;  %v370_v41 = vrot.slane %v358_v28, %v1310_v4  ;;  %v374_v42 = vrot.slane %v358_v28, %v1313_v5  ;;  %v386_v44 = vrot.slane %v965_v33, %v1304_v2  ;;  %v613_v19 = vld [vmem:[#allocation4 + $0x20] ss:$8 sm:$0xf] }
  0x46   : > { %304 = vst [vmem:[#allocation3 + $0x30] sm:$0xff] %v292_v26  ;;  %305 = vst [vmem:[#allocation3 + $0x38] sm:$0xff] %v296_v27  ;;  %v390_v45 = vrot.slane %v965_v33, %v1307_v3  ;;  %v394_v46 = vrot.slane %v965_v33, %v1310_v4  ;;  %v398_v47 = vrot.slane %v965_v33, %v1313_v5  ;;  %v970_v24 = vld [vmem:[%s1318_s28 + $0x20] ss:$8 sm:$0xf] }
  0x47   : > { %325 = vst [vmem:[#allocation2 + $0x40] sm:$0xff] %v311_v29  ;;  %326 = vst [vmem:[#allocation2 + $0x48] sm:$0xff] %v315_v30  ;;  %v413_v49 = vrot.slane %v409_v38, %v1304_v2  ;;  %v417_v50 = vrot.slane %v409_v38, %v1307_v3  ;;  %v421_v51 = vrot.slane %v409_v38, %v1310_v4 }
  0x48   : > { %327 = vst [vmem:[#allocation2 + $0x50] sm:$0xff] %v319_v31  ;;  %328 = vst [vmem:[#allocation2 + $0x58] sm:$0xff] %v323_v32  ;;  %v425_v52 = vrot.slane %v409_v38, %v1313_v5  ;;  %v437_v54 = vrot.slane %v966_v43, %v1304_v2  ;;  %v441_v55 = vrot.slane %v966_v43, %v1307_v3 }
  0x49   : > { %353 = vst [vmem:[#allocation3 + $0x40] sm:$0xff] %v335_v34  ;;  %354 = vst [vmem:[#allocation3 + $0x48] sm:$0xff] %v339_v35  ;;  %v445_v56 = vrot.slane %v966_v43, %v1310_v4  ;;  %v449_v57 = vrot.slane %v966_v43, %v1313_v5  ;;  %v464_v59 = vrot.slane %v460_v48, %v1304_v2 }
  0x4a   : > { %355 = vst [vmem:[#allocation3 + $0x50] sm:$0xff] %v343_v36  ;;  %356 = vst [vmem:[#allocation3 + $0x58] sm:$0xff] %v347_v37  ;;  %v468_v60 = vrot.slane %v460_v48, %v1307_v3  ;;  %v472_v61 = vrot.slane %v460_v48, %v1310_v4  ;;  %v476_v62 = vrot.slane %v460_v48, %v1313_v5 }
  0x4b   : > { %376 = vst [vmem:[#allocation2 + $0x60] sm:$0xff] %v362_v39  ;;  %377 = vst [vmem:[#allocation2 + $0x68] sm:$0xff] %v366_v40  ;;  %v488_v0 = vrot.slane %v967_v53, %v1304_v2  ;;  %v492_v6 = vrot.slane %v967_v53, %v1307_v3  ;;  %v496_v7 = vrot.slane %v967_v53, %v1310_v4 }
  0x4c   : > { %378 = vst [vmem:[#allocation2 + $0x70] sm:$0xff] %v370_v41  ;;  %379 = vst [vmem:[#allocation2 + $0x78] sm:$0xff] %v374_v42  ;;  %v500_v8 = vrot.slane %v967_v53, %v1313_v5  ;;  %v515_v10 = vrot.slane %v511_v58, %v1304_v2  ;;  %v519_v11 = vrot.slane %v511_v58, %v1307_v3 }
  0x4d   : > { %404 = vst [vmem:[#allocation3 + $0x60] sm:$0xff] %v386_v44  ;;  %405 = vst [vmem:[#allocation3 + $0x68] sm:$0xff] %v390_v45  ;;  %v523_v12 = vrot.slane %v511_v58, %v1310_v4  ;;  %v527_v13 = vrot.slane %v511_v58, %v1313_v5  ;;  %v539_v15 = vrot.slane %v968_v63, %v1304_v2 }
  0x4e   : > { %406 = vst [vmem:[#allocation3 + $0x70] sm:$0xff] %v394_v46  ;;  %407 = vst [vmem:[#allocation3 + $0x78] sm:$0xff] %v398_v47  ;;  %v543_v16 = vrot.slane %v968_v63, %v1307_v3  ;;  %v547_v17 = vrot.slane %v968_v63, %v1310_v4  ;;  %v551_v18 = vrot.slane %v968_v63, %v1313_v5 }
  0x4f   : > { %427 = vst [vmem:[#allocation2 + $0x80] sm:$0xff] %v413_v49  ;;  %428 = vst [vmem:[#allocation2 + $0x88] sm:$0xff] %v417_v50  ;;  %v566_v20 = vrot.slane %v562_v9, %v1304_v2  ;;  %v570_v21 = vrot.slane %v562_v9, %v1307_v3  ;;  %v574_v22 = vrot.slane %v562_v9, %v1310_v4 }
  0x50   : > { %429 = vst [vmem:[#allocation2 + $0x90] sm:$0xff] %v421_v51  ;;  %430 = vst [vmem:[#allocation2 + $0x98] sm:$0xff] %v425_v52  ;;  %v578_v23 = vrot.slane %v562_v9, %v1313_v5  ;;  %v590_v25 = vrot.slane %v969_v14, %v1304_v2  ;;  %v594_v26 = vrot.slane %v969_v14, %v1307_v3 }
  0x51   : > { %455 = vst [vmem:[#allocation3 + $0x80] sm:$0xff] %v437_v54  ;;  %456 = vst [vmem:[#allocation3 + $0x88] sm:$0xff] %v441_v55  ;;  %v598_v27 = vrot.slane %v969_v14, %v1310_v4  ;;  %v602_v28 = vrot.slane %v969_v14, %v1313_v5  ;;  %v617_v29 = vrot.slane %v613_v19, %v1304_v2 }
  0x52   : > { %457 = vst [vmem:[#allocation3 + $0x90] sm:$0xff] %v445_v56  ;;  %458 = vst [vmem:[#allocation3 + $0x98] sm:$0xff] %v449_v57  ;;  %v621_v30 = vrot.slane %v613_v19, %v1307_v3  ;;  %v625_v31 = vrot.slane %v613_v19, %v1310_v4  ;;  %v629_v32 = vrot.slane %v613_v19, %v1313_v5 }
  0x53   : > { %478 = vst [vmem:[#allocation2 + $0xa0] sm:$0xff] %v464_v59  ;;  %479 = vst [vmem:[#allocation2 + $0xa8] sm:$0xff] %v468_v60  ;;  %v641_v33 = vrot.slane %v970_v24, %v1304_v2  ;;  %v645_v34 = vrot.slane %v970_v24, %v1307_v3  ;;  %v649_v35 = vrot.slane %v970_v24, %v1310_v4 }
  0x54   : > { %480 = vst [vmem:[#allocation2 + $0xb0] sm:$0xff] %v472_v61  ;;  %481 = vst [vmem:[#allocation2 + $0xb8] sm:$0xff] %v476_v62  ;;  %v653_v36 = vrot.slane %v970_v24, %v1313_v5 }
  0x55   : > { %506 = vst [vmem:[#allocation3 + $0xa0] sm:$0xff] %v488_v0  ;;  %507 = vst [vmem:[#allocation3 + $0xa8] sm:$0xff] %v492_v6 }
  0x56   : > { %508 = vst [vmem:[#allocation3 + $0xb0] sm:$0xff] %v496_v7  ;;  %509 = vst [vmem:[#allocation3 + $0xb8] sm:$0xff] %v500_v8 }
  0x57   : > { %529 = vst [vmem:[#allocation2 + $0xc0] sm:$0xff] %v515_v10  ;;  %530 = vst [vmem:[#allocation2 + $0xc8] sm:$0xff] %v519_v11 }
  0x58   : > { %531 = vst [vmem:[#allocation2 + $0xd0] sm:$0xff] %v523_v12  ;;  %532 = vst [vmem:[#allocation2 + $0xd8] sm:$0xff] %v527_v13 }
  0x59   : > { %557 = vst [vmem:[#allocation3 + $0xc0] sm:$0xff] %v539_v15  ;;  %558 = vst [vmem:[#allocation3 + $0xc8] sm:$0xff] %v543_v16 }
  0x5a   : > { %559 = vst [vmem:[#allocation3 + $0xd0] sm:$0xff] %v547_v17  ;;  %560 = vst [vmem:[#allocation3 + $0xd8] sm:$0xff] %v551_v18 }
  0x5b   : > { %580 = vst [vmem:[#allocation2 + $0xe0] sm:$0xff] %v566_v20  ;;  %581 = vst [vmem:[#allocation2 + $0xe8] sm:$0xff] %v570_v21 }
  0x5c   : > { %582 = vst [vmem:[#allocation2 + $0xf0] sm:$0xff] %v574_v22  ;;  %583 = vst [vmem:[#allocation2 + $0xf8] sm:$0xff] %v578_v23 }
  0x5d   : > { %608 = vst [vmem:[#allocation3 + $0xe0] sm:$0xff] %v590_v25  ;;  %609 = vst [vmem:[#allocation3 + $0xe8] sm:$0xff] %v594_v26 }
  0x5e   : > { %610 = vst [vmem:[#allocation3 + $0xf0] sm:$0xff] %v598_v27  ;;  %611 = vst [vmem:[#allocation3 + $0xf8] sm:$0xff] %v602_v28 }
  0x5f   : > { %631 = vst [vmem:[#allocation2 + $0x100] sm:$0xff] %v617_v29  ;;  %632 = vst [vmem:[#allocation2 + $0x108] sm:$0xff] %v621_v30 }
  0x60   : > { %633 = vst [vmem:[#allocation2 + $0x110] sm:$0xff] %v625_v31  ;;  %634 = vst [vmem:[#allocation2 + $0x118] sm:$0xff] %v629_v32 }
  0x61   : > { %659 = vst [vmem:[#allocation3 + $0x100] sm:$0xff] %v641_v33  ;;  %660 = vst [vmem:[#allocation3 + $0x108] sm:$0xff] %v645_v34 }
  0x62   : > { %661 = vst [vmem:[#allocation3 + $0x110] sm:$0xff] %v649_v35  ;;  %662 = vst [vmem:[#allocation3 + $0x118] sm:$0xff] %v653_v36 }
  0x63 LB: >> { %s971_s3 = sshll.u32 %s1178_s30, 3  ;;  %v676_v2 = vld [vmem:[#allocation2] sm:$0xff]  ;;  %v677_v49 = vld [vmem:[#allocation2 + $0x8] sm:$0xff]  ;;  %v678_v22 = vld [vmem:[#allocation2 + $0x10] sm:$0xff]  ;;  %s672_s30 = sadd.s32 1, %s1178_s30   ;;  %s1178_s30 = sphi %s1402_s30, %s672_s30  }
  0x64   : >> { %v684_v3 = vld [vmem:[#allocation3] sm:$0xff]  ;;  %v674_v5 = vstv %s971_s3  ;;  %v685_v50 = vld [vmem:[#allocation3 + $0x8] sm:$0xff]  ;;  %s1422_s4 = sshra.s32 %s971_s3, 3  ;;  %v686_v23 = vld [vmem:[#allocation3 + $0x10] sm:$0xff]  ;;  %p669_p8 = scmp.ge.s32.totalorder %s672_s30, 32  }
  0x65   : >> { %v692_v4 = vld [vmem:[#allocation2 + $0x20] sm:$0xff]  ;;  %v1409_v40 = vadd.s32 %v674_v5, %v1300_v1  ;;  %v693_v51 = vld [vmem:[#allocation2 + $0x28] sm:$0xff]  ;;  %s980_s5 = sshll.u32 %s1422_s4, 5  ;;  %v694_v24 = vld [vmem:[#allocation2 + $0x30] sm:$0xff]  ;;  %s981_s7 = sshll.u32 (%p669_p8), %s1166_s12, 14 }
  0x66   : >> { %v700_v37 = vld [vmem:[#allocation3 + $0x20] sm:$0xff]  ;;  %v701_v54 = vld [vmem:[#allocation3 + $0x28] sm:$0xff]  ;;  %s1450_s6 = scalar_lea.vmem %s193_s29, %s980_s5 [#allocation7]  ;;  %v702_v27 = vld [vmem:[#allocation3 + $0x30] sm:$0xff]  ;;  %s1505_s16 = scalar_lea.hbm (%p669_p8), %s1561_s2, %s981_s7 }
  0x67   : >> { %v708_v38 = vld [vmem:[#allocation2 + $0x40] sm:$0xff]  ;;  %vm680_vm0 = vcmp.eq.s32.totalorder %v1409_v40, %v676_v2  ;;  %vm696_vm1 = vcmp.eq.s32.totalorder %v1409_v40, %v692_v4  ;;  %v709_v55 = vld [vmem:[#allocation2 + $0x48] sm:$0xff]  ;;  %vm681_vm9 = vcmp.eq.s32.totalorder %v1409_v40, %v677_v49  ;;  %vm697_vm10 = vcmp.eq.s32.totalorder %v1409_v40, %v693_v51  ;;  %v710_v28 = vld [vmem:[#allocation2 + $0x50] sm:$0xff]  ;;  %s848_s18 = sshll.u32 (%p669_p8), %s193_s29, 4  ;;  %s1513_s23 = scalar_lea.sflag (%p669_p8), [#allocation6], %s191_s20  ;;  %s1509_s18 = int_to_ptr.vmem [resolvable:$true] %s848_s18 }
  0x68   : >> { %v724_v39 = vld [vmem:[#allocation2 + $0x60] sm:$0xff]  ;;  %vm712_vm2 = vcmp.eq.s32.totalorder %v1409_v40, %v708_v38  ;;  %v688_v52 = vsel %vm680_vm0, %v684_v3, 0.0  ;;  %v717_v58 = vld [vmem:[#allocation3 + $0x48] sm:$0xff]  ;;  %v689_v63 = vsel %vm681_vm9, %v685_v50, 0.0  ;;  %vm713_vm11 = vcmp.eq.s32.totalorder %v1409_v40, %v709_v55  ;;  %v718_v29 = vld [vmem:[#allocation3 + $0x50] sm:$0xff]  ;;  %s1088_s24 = scalar_lea.vmem (%p669_p8), %s1509_s18, 16384 }
  0x69   : >> { %v716_v41 = vld [vmem:[#allocation3 + $0x40] sm:$0xff]  ;;  %vm728_vm3 = vcmp.eq.s32.totalorder %v1409_v40, %v724_v39  ;;  %v704_v56 = vsel %vm696_vm1, %v700_v37, %v688_v52  ;;  %v725_v59 = vld [vmem:[#allocation2 + $0x68] sm:$0xff]  ;;  %v705_v10 = vsel %vm697_vm10, %v701_v54, %v689_v63  ;;  %v726_v33 = vld [vmem:[#allocation2 + $0x70] sm:$0xff]  ;;  %p1089_p10 = scmp.ne.s32.totalorder (%p669_p8), %s1509_s18, %s1088_s24  ;;  %p1573_p11 = scmp.ne.s32.totalorder (%p669_p8), %s1566_s19, 0 }
  0x6a   : >> { %v740_v42 = vld [vmem:[#allocation2 + $0x80] sm:$0xff]  ;;  %v741_v60 = vld [vmem:[#allocation2 + $0x88] sm:$0xff]  ;;  %v720_v61 = vsel %vm712_vm2, %v716_v41, %v704_v56  ;;  %vm729_vm12 = vcmp.eq.s32.totalorder %v1409_v40, %v725_v59  ;;  %v721_v15 = vsel %vm713_vm11, %v717_v58, %v705_v10  ;;  %vm682_vm2 = vcmp.eq.s32.totalorder %v1409_v40, %v678_v22  ;;  %v734_v34 = vld [vmem:[#allocation3 + $0x70] sm:$0xff]  ;;  %s1183_s12 = smov (%p669_p8), [#allocation7]  }
  0x6b   : >> { %v756_v43 = vld [vmem:[#allocation2 + $0xa0] sm:$0xff]  ;;  %vm744_vm4 = vcmp.eq.s32.totalorder %v1409_v40, %v740_v42  ;;  %v733_v0 = vld [vmem:[#allocation3 + $0x68] sm:$0xff]  ;;  %vm745_vm13 = vcmp.eq.s32.totalorder %v1409_v40, %v741_v60  ;;  %v690_v32 = vsel %vm682_vm2, %v686_v23, 0.0  ;;  %v742_v35 = vld [vmem:[#allocation2 + $0x90] sm:$0xff]  ;;  %p1090_p13 = pnand (%p669_p8), %p1089_p10, %p1573_p11  ;;  %s1092_s26 = sshll.u32 (%p669_p8), %s1183_s12, 4  ;;  %s1093_s26 = int_to_ptr.vmem [resolvable:$false] %s1092_s26 }
  0x6c   : >> { %v772_v44 = vld [vmem:[#allocation2 + $0xc0] sm:$0xff]  ;;  %vm760_vm5 = vcmp.eq.s32.totalorder %v1409_v40, %v756_v43  ;;  %v749_v6 = vld [vmem:[#allocation3 + $0x88] sm:$0xff]  ;;  %v737_v20 = vsel %vm729_vm12, %v733_v0, %v721_v15  ;;  %v750_v4 = vld [vmem:[#allocation3 + $0x90] sm:$0xff]  ;;  %s1094_s27 = scalar_lea.vmem (%p669_p8), %s1093_s26, 32768  ;;  %p1095_p3 = scmp.lt.s32.totalorder (%p669_p8), %s1509_s18, %s1093_s26 }
  0x6d   : >> { %v732_v45 = vld [vmem:[#allocation3 + $0x60] sm:$0xff]  ;;  %vm776_vm6 = vcmp.eq.s32.totalorder %v1409_v40, %v772_v44  ;;  %v757_v7 = vld [vmem:[#allocation2 + $0xa8] sm:$0xff]  ;;  %v753_v26 = vsel %vm745_vm13, %v749_v6, %v737_v20  ;;  %v758_v5 = vld [vmem:[#allocation2 + $0xb0] sm:$0xff]  ;;  %p1091_p1 = pneg (%p669_p8), %p1090_p13  ;;  %p1096_p5 = scmp.lt.s32.totalorder (%p669_p8), %s1094_s27, %s1088_s24 }
  0x6e   : >> { %v1411_v46 = vld [vmem:[#allocation2 + $0xe0] sm:$0xff]  ;;  %v736_v8 = vsel %vm728_vm3, %v732_v45, %v720_v61  ;;  %v765_v11 = vld [vmem:[#allocation3 + $0xa8] sm:$0xff]  ;;  %vm761_vm14 = vcmp.eq.s32.totalorder %v1409_v40, %v757_v7  ;;  %vm698_vm3 = vcmp.eq.s32.totalorder %v1409_v40, %v694_v24  ;;  %v766_v37 = vld [vmem:[#allocation3 + $0xb0] sm:$0xff] }
  0x6f   : >> { %v1413_v47 = vld [vmem:[#allocation2 + $0x100] sm:$0xff]  ;;  %vm792_vm7 = vcmp.eq.s32.totalorder %v1409_v40, %v1411_v46  ;;  %v773_v12 = vld [vmem:[#allocation2 + $0xc8] sm:$0xff]  ;;  %v769_v31 = vsel %vm761_vm14, %v765_v11, %v753_v26  ;;  %v706_v3 = vsel %vm698_vm3, %v702_v27, %v690_v32  ;;  %v774_v41 = vld [vmem:[#allocation2 + $0xd0] sm:$0xff]  ;;  %p1097_p6 = por (%p669_p8), %p1096_p5, %p1095_p3 }
  0x70   : >> { %v748_v48 = vld [vmem:[#allocation3 + $0x80] sm:$0xff]  ;;  %vm808_vm8 = vcmp.eq.s32.totalorder %v1409_v40, %v1413_v47  ;;  %v789_v13 = vld [vmem:[#allocation2 + $0xe8] sm:$0xff]  ;;  %vm777_vm15 = vcmp.eq.s32.totalorder %v1409_v40, %v773_v12  ;;  %v782_v42 = vld [vmem:[#allocation3 + $0xd0] sm:$0xff] }
  0x71   : >> { %v764_v53 = vld [vmem:[#allocation3 + $0xa0] sm:$0xff]  ;;  %v752_v14 = vsel %vm744_vm4, %v748_v48, %v736_v8  ;;  %v781_v16 = vld [vmem:[#allocation3 + $0xc8] sm:$0xff]  ;;  %vm793_vm0 = vcmp.eq.s32.totalorder %v1409_v40, %v789_v13  ;;  %vm714_vm4 = vcmp.eq.s32.totalorder %v1409_v40, %v710_v28  ;;  %v790_v43 = vld [vmem:[#allocation2 + $0xf0] sm:$0xff]  ;;  %p1098_p7 = pnand (%p669_p8), %p1097_p6, %p1091_p1 }
  0x72   : >> { %v780_v57 = vld [vmem:[#allocation3 + $0xc0] sm:$0xff]  ;;  %v797_v17 = vld [vmem:[#allocation3 + $0xe8] sm:$0xff]  ;;  %v768_v19 = vsel %vm760_vm5, %v764_v53, %v752_v14  ;;  %v785_v2 = vsel %vm777_vm15, %v781_v16, %v769_v31  ;;  %vm730_vm5 = vcmp.eq.s32.totalorder %v1409_v40, %v726_v33  ;;  %v722_v39 = vsel %vm714_vm4, %v718_v29, %v706_v3  ;;  %v798_v46 = vld [vmem:[#allocation3 + $0xf0] sm:$0xff] }
  0x73   : >> { %v796_v62 = vld [vmem:[#allocation3 + $0xe0] sm:$0xff]  ;;  %v805_v18 = vld [vmem:[#allocation2 + $0x108] sm:$0xff]  ;;  %v784_v25 = vsel %vm776_vm6, %v780_v57, %v768_v19  ;;  %v801_v38 = vsel %vm793_vm0, %v797_v17, %v785_v2  ;;  %vm746_vm6 = vcmp.eq.s32.totalorder %v1409_v40, %v742_v35  ;;  %v738_v45 = vsel %vm730_vm5, %v734_v34, %v722_v39  ;;  %v806_v47 = vld [vmem:[#allocation2 + $0x110] sm:$0xff] }
  0x74   : >> { %v812_v9 = vld [vmem:[#allocation3 + $0x100] sm:$0xff]  ;;  %vm809_vm1 = vcmp.eq.s32.totalorder %v1409_v40, %v805_v18  ;;  %v813_v21 = vld [vmem:[#allocation3 + $0x108] sm:$0xff]  ;;  %v800_v30 = vsel %vm792_vm7, %v796_v62, %v784_v25  ;;  %vm762_vm7 = vcmp.eq.s32.totalorder %v1409_v40, %v758_v5  ;;  %v814_v48 = vld [vmem:[#allocation3 + $0x110] sm:$0xff]  ;;  %v754_v49 = vsel %vm746_vm6, %v750_v4, %v738_v45 }
  0x75   : >> { %v816_v36 = vsel %vm808_vm8, %v812_v9, %v800_v30  ;;  %v817_v44 = vsel %vm809_vm1, %v813_v21, %v801_v38  ;;  %vm778_vm8 = vcmp.eq.s32.totalorder %v1409_v40, %v774_v41  ;;  %vm794_vm9 = vcmp.eq.s32.totalorder %v1409_v40, %v790_v43  ;;  %v679_v50 = vld [vmem:[#allocation2 + $0x18] sm:$0xff] }
  0x76   : >> { %825 = vst [vmem:[%s1450_s6] sm:$0xff] %v816_v36  ;;  %826 = vst [vmem:[%s1450_s6 + $0x8] sm:$0xff] %v817_v44  ;;  %v687_v51 = vld [vmem:[#allocation3 + $0x18] sm:$0xff]  ;;  %v770_v53 = vsel %vm762_vm7, %v766_v37, %v754_v49  ;;  %vm810_vm10 = vcmp.eq.s32.totalorder %v1409_v40, %v806_v47  ;;  %vm683_vm11 = vcmp.eq.s32.totalorder %v1409_v40, %v679_v50 }
  0x77   : >> { %v695_v52 = vld [vmem:[#allocation2 + $0x38] sm:$0xff]  ;;  %v786_v57 = vsel %vm778_vm8, %v782_v42, %v770_v53  ;;  %v691_v58 = vsel %vm683_vm11, %v687_v51, 0.0 }
  0x78   : >> { %vm699_vm12 = vcmp.eq.s32.totalorder %v1409_v40, %v695_v52  ;;  %v703_v54 = vld [vmem:[#allocation3 + $0x38] sm:$0xff]  ;;  %v802_v62 = vsel %vm794_vm9, %v798_v46, %v786_v57 }
  0x79   : >> { %v711_v55 = vld [vmem:[#allocation2 + $0x58] sm:$0xff]  ;;  %v707_v63 = vsel %vm699_vm12, %v703_v54, %v691_v58  ;;  %v818_v7 = vsel %vm810_vm10, %v814_v48, %v802_v62 }
  0x7a   : >> { %v719_v56 = vld [vmem:[#allocation3 + $0x58] sm:$0xff]  ;;  %vm715_vm13 = vcmp.eq.s32.totalorder %v1409_v40, %v711_v55  ;;  %827 = vst [vmem:[%s1450_s6 + $0x10] sm:$0xff] %v818_v7 }
  0x7b   : >> { %v727_v59 = vld [vmem:[#allocation2 + $0x78] sm:$0xff]  ;;  %v723_v8 = vsel %vm715_vm13, %v719_v56, %v707_v63 }
  0x7c   : >> { %v735_v60 = vld [vmem:[#allocation3 + $0x78] sm:$0xff]  ;;  %vm731_vm14 = vcmp.eq.s32.totalorder %v1409_v40, %v727_v59 }
  0x7d   : >> { %v743_v61 = vld [vmem:[#allocation2 + $0x98] sm:$0xff]  ;;  %v739_v12 = vsel %vm731_vm14, %v735_v60, %v723_v8 }
  0x7e   : >> { %vm747_vm15 = vcmp.eq.s32.totalorder %v1409_v40, %v743_v61  ;;  %v751_v0 = vld [vmem:[#allocation3 + $0x98] sm:$0xff] }
  0x7f   : >> { %v759_v6 = vld [vmem:[#allocation2 + $0xb8] sm:$0xff]  ;;  %v755_v15 = vsel %vm747_vm15, %v751_v0, %v739_v12 }
  0x80   : >> { %vm763_vm0 = vcmp.eq.s32.totalorder %v1409_v40, %v759_v6  ;;  %v767_v9 = vld [vmem:[#allocation3 + $0xb8] sm:$0xff] }
  0x81   : >> { %v775_v10 = vld [vmem:[#allocation2 + $0xd8] sm:$0xff]  ;;  %v771_v17 = vsel %vm763_vm0, %v767_v9, %v755_v15 }
  0x82   : >> { %v791_v11 = vld [vmem:[#allocation2 + $0xf8] sm:$0xff]  ;;  %vm779_vm1 = vcmp.eq.s32.totalorder %v1409_v40, %v775_v10  ;;  %671 = sbr.rel (!%p669_p8) target bundleno = 99 (0x63), region = 109 }
  0x83   : >> { %v783_v13 = vld [vmem:[#allocation3 + $0xd8] sm:$0xff]  ;;  %vm795_vm2 = vcmp.eq.s32.totalorder %v1409_v40, %v791_v11 }
  0x84   : >> { %v807_v14 = vld [vmem:[#allocation2 + $0x118] sm:$0xff]  ;;  %v787_v19 = vsel %vm779_vm1, %v783_v13, %v771_v17 }
  0x85   : >> { %v799_v16 = vld [vmem:[#allocation3 + $0xf8] sm:$0xff]  ;;  %vm811_vm3 = vcmp.eq.s32.totalorder %v1409_v40, %v807_v14 }
  0x86   : >> { %v815_v18 = vld [vmem:[#allocation3 + $0x118] sm:$0xff]  ;;  %v803_v20 = vsel %vm795_vm2, %v799_v16, %v787_v19 }
  0x87   : >> { %v819_v21 = vsel %vm811_vm3, %v815_v18, %v803_v20 }
  0x88   : >> { %828 = vst [vmem:[%s1450_s6 + $0x18] sm:$0xff] %v819_v21 }
  0x89   : > { %1101 = shalt.err (!%p1098_p7)
}
  0x8a   : > { %s1102_s20 = scalar_lea.hbm %s1505_s16, 16384  ;;  %s1106_s29 = scalar_lea.hbm %s1561_s2, 65536 }
  0x8b   : > { %p1103_p9 = scmp.ne.s32.totalorder %s1505_s16, %s1102_s20  ;;  %p1107_p2 = scmp.lt.u32.totalorder %s1505_s16, %s1561_s2 }
  0x8c   : > { %p1108_p4 = scmp.lt.u32.totalorder %s1106_s29, %s1102_s20  ;;  %p1110_p10 = scmp.lt.u32.totalorder %s1102_s20, %s1505_s16 }
  0x8d   : > { %p1104_p12 = pnand %p1103_p9, %p1573_p11 }
  0x8e   : > { %p1109_p8 = por %p1108_p4, %p1107_p2 }
  0x8f   : > { %p1105_p0 = pneg %p1104_p12 }
  0x90   : > { %p1111_p13 = por %p1110_p10, %p1109_p8 }
  0x92   : > { %p1112_p1 = pnand %p1111_p13, %p1105_p0 }
  0x94   : > { %1115 = shalt.err (!%p1112_p1)
}
  0x95   : > { %s1184_s4 = smov 512   ;;  %s1185_s5 = smov 32  }
  0x96   : > { %986 = dma.vmem_to_hbm [thread:$0]  (%p1573_p11), %s1509_s18, 16384, %s1505_s16, %s1513_s23, %s1184_s4, %s1184_s4, %s1185_s5  }
  0x97 PF: > { %p998_p3 = scmp.ge.s32.totalorder %s1174_s14, 2  ;;  %s863_s6 = sand.u32 1, %s1154_s9  }
  0x98   : > { %p1574_p5 = scmp.ne.s32.totalorder %s1567_s21, 0  ;;  %s864_s7 = scalar_lea.sflag [#allocation6], %s863_s6 }
  0x9a   : > { %p993_p6 = pnand %p998_p3, %p1574_p5 }
  0x9c   : > { %1149 = dma.done.wait (!%p993_p6), %s864_s7, 16384  }
  0x9d   : > { %1151 = vsyncadd (!%p993_p6), %s864_s7, 4294950912  ;;  %s16_s14 = sadd.s32 1, %s1174_s14   ;;  %s1575_s9 = smov %s1158_s10 }
  0x9e   : > { %p13_p7 = scmp.ge.s32.totalorder %s16_s14, 6   ;;  %s1576_s10 = smov %s1162_s11 }
  0x9f   : > { %s1577_s11 = smov %s1254_s22  ;;  %s1578_s12 = smov %s1170_s13 }
  0xa0   : > { %s1579_s13 = smov %s1581_s17  ;;  %15 = sbr.rel (!%p13_p7) target bundleno = 5 (0x5), region = 120 }
  0xa7   :  { %869 = vsyncpa [#allocation5], 1 }
  0xa8   :  { %871 = vsyncpa [#allocation5 + $0x1], 1 }
  0xa9   :  { %872 = vsyncpa [#allocation6], 1 }
  0xaa   :  { %874 = vsyncpa [#allocation6 + $0x1], 1 }

</bundles_post_ra>
